<compile_context>
chip_gen: v6e
topology: v6e:2x2x1
jax: 0.10.0
libtpu: 0.0.40
codegen_flags: <defaults>
</compile_context>

<pallas_src>
import math

import jax
import jax.numpy as jnp
from jax.experimental import pallas as pl
from jax.experimental.pallas import tpu as pltpu


def _copy_kernel(x_ref, o_ref):
    # Whole-block identity copy; DMA-bound, no in-kernel slicing/reshape.
    o_ref[...] = x_ref[...]


def _vmem_capacity_bytes() -> int:
    """Physical VMEM of the attached TPU; conservative default if unknown."""
    try:
        return int(pltpu.get_tpu_info().vmem_capacity_bytes)
    except Exception:
        return 64 * 1024 * 1024  # assume v7x-sized VMEM (the tightest case)


def _pallas_identity_copy(x_flat: jax.Array) -> jax.Array:
    """Identity-copy a 1-D array through a lane-dense tiled Pallas kernel.

    Caller guarantees x_flat.size % 128 == 0 and x_flat.size > 0.
    """
    total = x_flat.shape[0]
    itemsize = jnp.dtype(x_flat.dtype).itemsize

    # --- Lane width: largest divisor of the flattened total (wider rows ->
    # longer contiguous DMA, fewer descriptors, always unmasked stores).
    lane_c = None
    for c in (8192, 4096, 2048, 1024, 512, 256, 128):
        if total % c == 0:
            lane_c = c
            break
    assert lane_c is not None, "caller must guarantee total % 128 == 0"
    rows = total // lane_c

    # --- Generation-aware block / VMEM budget.
    vmem_cap = _vmem_capacity_bytes()
    target_block_bytes = 8 * 1024 * 1024          # ~8 MiB blocks on all chips
    if vmem_cap >= 100 * 1024 * 1024:             # v5e / v6e: 128 MiB physical
        vmem_limit = 64 * 1024 * 1024
    else:                                         # v7x: 64 MiB physical
        vmem_limit = 40 * 1024 * 1024

    # --- Rows per block: dtype-aware sublane multiple, sized to the target.
    sublane = max(8, 32 // itemsize)              # f32->8, bf16->16, int8->32
    tile_r = (target_block_bytes // (lane_c * itemsize)) // sublane * sublane
    tile_r = max(sublane, tile_r)
    tile_r = min(tile_r, rows)                    # full extent is always legal

    # --- Ensure >=2 blocks for large inputs so v7x's two TCs both stream HBM.
    total_bytes = rows * lane_c * itemsize
    if total_bytes > 4 * 1024 * 1024 and pl.cdiv(rows, tile_r) < 2:
        tile_r = max(sublane, (rows // 2) // sublane * sublane)

    # --- Prefer a tile_r that divides rows (avoid a masked partial last
    # block); bounded search, falls back to the original tile_r.
    if tile_r < rows and rows % tile_r != 0:
        cand = tile_r
        for _ in range(64):
            if cand < sublane:
                break
            if rows % cand == 0:
                tile_r = cand
                break
            cand -= sublane

    grid = (pl.cdiv(rows, tile_r),)
    x2d = jnp.reshape(x_flat, (rows, lane_c))

    y2d = pl.pallas_call(
        _copy_kernel,
        out_shape=jax.ShapeDtypeStruct((rows, lane_c), x_flat.dtype),
        grid_spec=pl.GridSpec(
            grid=grid,
            in_specs=[pl.BlockSpec((tile_r, lane_c), lambda i: (i, 0))],
            out_specs=pl.BlockSpec((tile_r, lane_c), lambda i: (i, 0)),
        ),
        # Output aliases the input buffer: no second N-byte HBM allocation.
        input_output_aliases={0: 0},
        compiler_params=pltpu.CompilerParams(
            dimension_semantics=("parallel",),   # megacore sharding on v7x
            vmem_limit_bytes=vmem_limit,
        ),
    )(x2d)

    return jnp.reshape(y2d, (total,))


class Flatten:
    """JAX/Pallas equivalent of the PyTorch Flatten module.

    Default path is the metadata-only `jnp.reshape` (strictly faster than any
    copy).  Set `use_pallas_copy=True` to route the data through the Pallas
    identity-copy kernel instead (exercise / demonstration only).
    """

    def __init__(self, start_dim: int = 1, end_dim: int = -1,
                 use_pallas_copy: bool = False) -> None:
        self.start_dim = start_dim
        self.end_dim = end_dim
        self.use_pallas_copy = use_pallas_copy

    def __call__(self, x: jax.Array) -> jax.Array:
        t_dims = x.shape
        end = self.end_dim if self.end_dim >= 0 else len(t_dims) + self.end_dim
        flattened_size = math.prod(t_dims[self.start_dim:end + 1])
        new_shape = t_dims[:self.start_dim] + (flattened_size,) + t_dims[end + 1:]

        total = math.prod(t_dims) if len(t_dims) > 0 else 1

        # Metadata-only reshape is the default (and the only path when the
        # lane-dense tiled kernel cannot apply cleanly).
        if (not self.use_pallas_copy) or total == 0 or total % 128 != 0:
            return jnp.reshape(x, new_shape)

        y_flat = _pallas_identity_copy(jnp.reshape(x, (total,)))
        return jnp.reshape(y_flat, new_shape)


if __name__ == "__main__":
    key = jax.random.PRNGKey(0)
    # Small NCHW input consistent with typical CNN usage: (2, 4, 16, 16).
    x = jax.random.normal(key, (2, 4, 16, 16), dtype=jnp.float32)

    # Default (recommended) path: pure metadata reshape.
    flatten_default = Flatten(start_dim=1, end_dim=-1)
    y_default = jax.block_until_ready(flatten_default(x))

    # Opt-in Pallas path: exercises the identity-copy kernel once on TPU.
    flatten_pallas = Flatten(start_dim=1, end_dim=-1, use_pallas_copy=True)
    y = jax.block_until_ready(flatten_pallas(x))

    # Reference check against plain reshape semantics (== PyTorch Flatten).
    y_ref = jnp.reshape(x, (2, 4 * 16 * 16))
    assert y.shape == (2, 1024), y.shape
    assert y.dtype == x.dtype
    assert bool(jnp.all(y == y_ref))
    assert y_default.shape == (2, 1024)
    assert bool(jnp.all(y_default == y_ref))

    print("KERNEL_OK")
</pallas_src>

<mosaic_0001>
module attributes {stable_mosaic.version = 11 : i64} {
  func.func @_copy_kernel(%arg0: i32, %arg1: memref<1x2048xf32, #tpu.memory_space<vmem>>, %arg2: memref<1x2048xf32, #tpu.memory_space<vmem>>) attributes {dimension_semantics = [#tpu.dimension_semantics<parallel>], iteration_bounds = array<i64: 1>, scalar_prefetch = 0 : i64, scratch_operands = 0 : i64, tpu.core_type = #tpu.core_type<tc>, window_params = [{transform_indices = @transform_0, window_bounds = array<i64: 1, 2048>}, {transform_indices = @transform_1, window_bounds = array<i64: 1, 2048>}]} {
    %c0 = arith.constant 0 : index
    %c0_0 = arith.constant 0 : index
    %0 = vector.load %arg1[%c0, %c0_0] : memref<1x2048xf32, #tpu.memory_space<vmem>>, vector<1x2048xf32>
    %c0_1 = arith.constant 0 : index
    %c0_2 = arith.constant 0 : index
    %1 = vector.load %arg2[%c0_1, %c0_2] : memref<1x2048xf32, #tpu.memory_space<vmem>>, vector<1x2048xf32>
    tpu.vector_store %arg2[%c0_1, %c0_2], %0 {strides = array<i32>} : memref<1x2048xf32, #tpu.memory_space<vmem>>, vector<1x2048xf32>,
    return
  }
  func.func @transform_0(%arg0: i32) -> (i32, i32) {
    %c0_i32 = arith.constant 0 : i32
    %c0_i32_0 = arith.constant 0 : i32
    return %arg0, %c0_i32 : i32, i32
  }
  func.func @transform_1(%arg0: i32) -> (i32, i32) {
    %c0_i32 = arith.constant 0 : i32
    %c0_i32_0 = arith.constant 0 : i32
    return %arg0, %c0_i32 : i32, i32
  }
}

</mosaic_0001>

<bundles_post_ra>
// kernel: tpu_custom_call.1
= control target key start
LH: loop header
LB: loop body
LE: loop exit
PB: predicated region body
PF: predicated region fallthrough
CT: control target
= control target key end

     0   :  { %6 = vsyncpa [#allocation3], 0  ;;  %s104_s0 = inlined_call_operand.hbm [shape: f32[1,2048], index: 0, kind: input, shape index: {}, may-alias: {0,1}]   ;;  %s105_s1 = inlined_call_operand.hbm [shape: f32[1,2048], index: 1, kind: output, shape index: {}, may-alias: {0,1}]  }
   0x1   :  { %7 = vsyncpa [#allocation4], 0  ;;  %s86_s6 = smov [#allocation2]  }
   0x2   :  { %s14_s7 = sshll.u32 %s86_s6, 4  ;;  %s15_s7 = int_to_ptr.vmem [resolvable:$true] %s14_s7 }
   0x3   :  { %s50_s8 = scalar_lea.vmem %s15_s7, 256  ;;  %p55_p1 = scmp.lt.s32.totalorder %s15_s7, %s15_s7 }
   0x4   :  { %p51_p0 = scmp.ne.s32.totalorder %s15_s7, %s50_s8  ;;  %p56_p2 = scmp.lt.s32.totalorder %s50_s8, %s50_s8 }
   0x6   :  { %p57_p3 = por %p56_p2, %p55_p1 }
   0x8   :  { %p58_p4 = pnand %p57_p3, %p51_p0 }
   0xa   :  { %61 = shalt.err (!%p58_p4)
}
   0xb   :  { %17 = dma.hbm_to_vmem [thread:$0]  %s104_s0, 256, %s15_s7, [#allocation3]  }
   0xc   :  { %82 = dma.done.wait [#allocation3], 256  }
   0xd   :  { %83 = vsyncadd [#allocation3], 4294967040  ;;  %s87_s11 = smov [#allocation5]   ;;  %v21_v0 = vld [vmem:[#allocation2] sm:$0xff]  ;;  %v22_v1 = vld [vmem:[#allocation2 + $0x8] sm:$0xff] }
   0xe   :  { %s31_s12 = sshll.u32 %s87_s11, 4  ;;  %23 = vst [vmem:[#allocation5] sm:$0xff] %v21_v0  ;;  %24 = vst [vmem:[#allocation5 + $0x8] sm:$0xff] %v22_v1  ;;  %s32_s12 = int_to_ptr.vmem [resolvable:$true] %s31_s12 }
   0xf   :  { %s62_s13 = scalar_lea.vmem %s32_s12, 256  ;;  %p67_p6 = scmp.lt.s32.totalorder %s32_s12, %s32_s12 }
  0x10   :  { %p63_p5 = scmp.ne.s32.totalorder %s32_s12, %s62_s13  ;;  %p68_p7 = scmp.lt.s32.totalorder %s62_s13, %s62_s13 }
  0x12   :  { %p69_p8 = por %p68_p7, %p67_p6 }
  0x14   :  { %p70_p9 = pnand %p69_p8, %p63_p5 }
  0x16   :  { %73 = shalt.err (!%p70_p9)
}
  0x17   :  { %34 = dma.vmem_to_hbm [thread:$0]  %s32_s12, 256, %s105_s1, [#allocation4]  }
  0x18   :  { %84 = dma.done.wait [#allocation4], 256  }
  0x19   :  { %85 = vsyncadd [#allocation4], 4294967040 }
  0x1a   :  { %38 = vsyncpa [#allocation3], 1 }
  0x1b   :  { %39 = vsyncpa [#allocation4], 1 }

</bundles_post_ra>
